<compile_context>
chip_gen: v7x
topology: tpu7x:2x2x1
jax: 0.10.0
libtpu: 0.0.40
codegen_flags: <defaults>
</compile_context>

<pallas_src>
import jax
import jax.numpy as jnp
from jax import lax
from jax.experimental import pallas as pl
from jax.experimental.pallas import tpu as pltpu

LANES = 128
SUB = 8                    # sublane chunk (one f32 vreg of rows per stream)
MAX_TILE_R = 1024          # 1024x128xf32 = 512 KiB per stream block
NUM_ACC = 8                # bce, pp, o_pp, mp, o_mp, pos, o, o_pos


def _tensorcores_per_chip():
    """2 only on v7x-style 2-TensorCore devices; 1 (safe default) elsewhere."""
    try:
        kind = jax.devices()[0].device_kind.lower()
        if "v7" in kind:
            return 2
    except Exception:
        pass
    return 1


def _make_kernel(rows, tile_r, blocks_per_core):
    chunks = tile_r // SUB
    unroll = 1
    for u in (8, 4, 2):
        if chunks % u == 0:
            unroll = u
            break

    def kernel(o_ref, t_ref, p_ref, acc_ref):
        c = pl.program_id(0)
        i = pl.program_id(1)

        @pl.when(jnp.logical_and(c == 0, i == 0) if False else (i == 0))
        def _init():
            acc_ref[...] = jnp.zeros_like(acc_ref)

        # UNclamped block index -> first row of this block in the full array.
        # (The in_map clamps so overshooting blocks re-read the last real
        #  block; the mask below, built from the unclamped index, zeroes them.)
        row0 = (c * blocks_per_core + i) * tile_r

        def accumulate(masked):
            def step(j, accs):
                r0 = pl.multiple_of(j * SUB, SUB)
                o = o_ref[pl.ds(r0, SUB), :].astype(jnp.float32)
                t = t_ref[pl.ds(r0, SUB), :].astype(jnp.float32)
                p = p_ref[pl.ds(r0, SUB), :].astype(jnp.float32)
                if masked:
                    # Kernel input is 128-lane aligned, so validity is
                    # row-granular (int32 row index: fine for n < 2^38 elems).
                    r = row0 + j * SUB + lax.broadcasted_iota(
                        jnp.int32, (SUB, LANES), 0)
                    valid = r < rows
                    # Sanitize to 0: clamped log => bce==0 on padding, and
                    # o==0 contributes nothing to any o-sum.  No vf needed.
                    o = jnp.where(valid, o, 0.0)
                    t = jnp.where(valid, t, 0.0)
                    p = jnp.where(valid, p, 0.0)

                # BCELoss(reduction='none'); PyTorch clamps log at -100.
                log_o = jnp.maximum(jnp.log(o), -100.0)
                log_1mo = jnp.maximum(jnp.log(1.0 - o), -100.0)
                bce = -(t * log_o + (1.0 - t) * log_1mo)

                mp = jnp.where(p > 0.5, 1.0, 0.0)    # protected
                pos = jnp.where(t > 0.5, 1.0, 0.0)   # positive
                mpp = mp * pos                        # protected & positive

                terms = (bce, mpp, o * mpp, mp, o * mp, pos, o, o * pos)
                return tuple(a + x for a, x in zip(accs, terms))

            init = (jnp.zeros((SUB, LANES), jnp.float32),) * NUM_ACC
            accs = lax.fori_loop(0, chunks, step, init, unroll=unroll)
            # Write the 8 (8,128) slabs to the resident output once per block.
            for k in range(NUM_ACC):
                acc_ref[k] = acc_ref[k] + accs[k]

        full = row0 + tile_r <= rows

        @pl.when(full)
        def _fast():                 # steady state: no masking work at all
            accumulate(masked=False)

        @pl.when(jnp.logical_not(full))
        def _slow():                 # at most one block per core
            accumulate(masked=True)

    return kernel


def _partial_sums(o, t, p):
    """Pure-JAX version of the 8 accumulated terms, for the ragged tail."""
    log_o = jnp.maximum(jnp.log(o), -100.0)
    log_1mo = jnp.maximum(jnp.log(1.0 - o), -100.0)
    bce = -(t * log_o + (1.0 - t) * log_1mo)
    mp = (p > 0.5).astype(jnp.float32)
    pos = (t > 0.5).astype(jnp.float32)
    mpp = mp * pos
    return jnp.stack([jnp.sum(bce), jnp.sum(mpp), jnp.sum(o * mpp),
                      jnp.sum(mp), jnp.sum(o * mp),
                      jnp.sum(pos), jnp.sum(o), jnp.sum(o * pos)])


def _finalize(sums, n, fairness_type, lambda_fair):
    s_base, s_pp, s_o_pp, s_mp, s_o_mp, s_pos, s_o, s_o_pos = (
        sums[0], sums[1], sums[2], sums[3], sums[4], sums[5], sums[6], sums[7])
    n_f = jnp.float32(n)

    # Derived group sums (not accumulated in-kernel).
    s_pn = s_mp - s_pp                   # protected & negative count
    s_o_pn = s_o_mp - s_o_pp
    s_up = s_pos - s_pp                  # unprotected & positive count
    s_un = (n_f - s_pos) - s_pn          # unprotected & negative count
    s_o_up = s_o_pos - s_o_pp
    s_o_un = (s_o - s_o_pos) - s_o_pn

    def safe_div(s, c):                  # == safe_mean given precomputed sums
        return jnp.where(c > 0, s / jnp.where(c > 0, c, 1.0), 0.0)

    n_prot = s_mp
    n_unprot = n_f - s_mp
    mean_base = s_base / n_f

    if fairness_type == 'demographic_parity':
        fairness = jnp.abs(safe_div(s_o_mp, n_prot)
                           - safe_div(s_o - s_o_mp, n_unprot))
    else:  # 'equalized_odds'
        fairness = (jnp.abs(safe_div(s_o_pp, s_pp) - safe_div(s_o_up, s_up))
                    + jnp.abs(safe_div(s_o_pn, s_pn) - safe_div(s_o_un, s_un)))

    has_both = jnp.logical_and(n_prot > 0, n_unprot > 0)
    return jnp.where(has_both, mean_base + lambda_fair * fairness, mean_base)


def improved_fairness_bce_loss(outputs, targets, protected_attrs, *,
                               fairness_type='demographic_parity',
                               lambda_fair=0.5):
    """Pallas implementation of ImprovedFairnessBCELoss.forward."""
    if fairness_type not in ('demographic_parity', 'equalized_odds'):
        raise ValueError(f'Unknown fairness type: {fairness_type}')

    n = int(outputs.size)
    if n == 0:
        # Degenerate empty input: avoid a 0-sized grid / divide-by-zero.
        return jnp.float32(0.0)

    o_flat = outputs.reshape(-1)
    t_flat = targets.reshape(-1)
    p_flat = protected_attrs.reshape(-1)

    align = SUB * LANES                  # 1024-element aligned kernel prefix
    n_main = (n // align) * align
    sums = jnp.zeros((NUM_ACC,), jnp.float32)

    if n_main > 0:
        rows = n_main // LANES           # multiple of 8 by construction
        tile_r = min(MAX_TILE_R, rows)
        total_blocks = -(-rows // tile_r)
        num_cores = _tensorcores_per_chip() if total_blocks > 1 else 1
        blocks_per_core = -(-total_blocks // num_cores)

        # Native dtypes straight into the kernel (upcast happens in VMEM).
        o2 = o_flat[:n_main].reshape(rows, LANES)
        t2 = t_flat[:n_main].reshape(rows, LANES)
        p2 = p_flat[:n_main].reshape(rows, LANES)

        def in_map(c, i):
            # Clamp so no core addresses a fully out-of-range block; the
            # in-kernel mask (unclamped index) zeroes such blocks anyway.
            return (jnp.minimum(c * blocks_per_core + i, total_blocks - 1), 0)

        in_spec = pl.BlockSpec((tile_r, LANES), in_map)
        out_spec = pl.BlockSpec((None, NUM_ACC, SUB, LANES),
                                lambda c, i: (c, 0, 0, 0))
        kernel = _make_kernel(rows, tile_r, blocks_per_core)
        out_shape = jax.ShapeDtypeStruct((num_cores, NUM_ACC, SUB, LANES),
                                         jnp.float32)

        if num_cores > 1:
            # Prefer a real per-TensorCore split on 2-TC parts (v7x); fall
            # back to plain "parallel" if CORE_PARALLEL is rejected.
            dim_options = [(pltpu.CORE_PARALLEL, pltpu.ARBITRARY),
                           (pltpu.PARALLEL, pltpu.ARBITRARY)]
        else:
            dim_options = [(pltpu.ARBITRARY, pltpu.ARBITRARY)]

        acc = None
        last_err = None
        for dims in dim_options:
            try:
                acc = pl.pallas_call(
                    kernel,
                    out_shape=out_shape,
                    grid=(num_cores, blocks_per_core),
                    in_specs=[in_spec, in_spec, in_spec],
                    out_specs=out_spec,
                    compiler_params=pltpu.CompilerParams(
                        dimension_semantics=dims),
                )(o2, t2, p2)
                break
            except Exception as e:   # pragma: no cover - v7x fallback only
                last_err = e
        if acc is None:
            raise last_err

        # Final (cores, sublanes, lanes) -> scalar reduce once, in plain JAX.
        sums = jnp.sum(acc, axis=(0, 2, 3))

    if n_main < n:
        # Ragged tail (< 1024 elements): fold into the sums in plain JAX
        # instead of padding (and re-copying) all three HBM streams.
        sums = sums + _partial_sums(o_flat[n_main:].astype(jnp.float32),
                                    t_flat[n_main:].astype(jnp.float32),
                                    p_flat[n_main:].astype(jnp.float32))

    return _finalize(sums, n, fairness_type, lambda_fair)


def _reference(outputs, targets, protected, fairness_type, lambda_fair):
    """Pure-JAX reference mirroring the PyTorch module."""
    o = outputs.reshape(-1).astype(jnp.float32)
    t = targets.reshape(-1).astype(jnp.float32)
    p = protected.reshape(-1).astype(jnp.float32)
    bce = -(t * jnp.maximum(jnp.log(o), -100.0)
            + (1 - t) * jnp.maximum(jnp.log(1 - o), -100.0))
    mp = (p > 0.5).astype(jnp.float32)
    mu = 1.0 - mp

    def safe_mean(x, m):
        c = jnp.sum(m)
        return jnp.where(c > 0, jnp.sum(x * m) / jnp.where(c > 0, c, 1.0), 0.0)

    if fairness_type == 'demographic_parity':
        fair = jnp.abs(safe_mean(o, mp) - safe_mean(o, mu))
    else:
        pos = (t > 0.5).astype(jnp.float32)
        neg = 1.0 - pos
        fair = (jnp.abs(safe_mean(o, mp * pos) - safe_mean(o, mu * pos))
                + jnp.abs(safe_mean(o, mp * neg) - safe_mean(o, mu * neg)))
    mean_base = jnp.mean(bce)
    has_both = jnp.logical_and(jnp.sum(mp) > 0, jnp.sum(mu) > 0)
    return jnp.where(has_both, mean_base + lambda_fair * fair, mean_base)


if __name__ == "__main__":
    key = jax.random.PRNGKey(0)

    def make_inputs(k, shape):
        k1, k2, k3 = jax.random.split(k, 3)
        outputs = jax.nn.sigmoid(jax.random.normal(k1, shape, jnp.float32))
        targets = jax.random.bernoulli(k2, 0.5, shape).astype(jnp.float32)
        protected = jax.random.bernoulli(k3, 0.4, shape).astype(jnp.float32)
        return outputs, targets, protected

    # (2,4,16,16): one full block, fast path only.
    # (3,1,200,320): two blocks (partial last block -> slow path) + ragged tail.
    # (2,1,7,11): smaller than one aligned block -> pure-JAX tail path.
    shapes = [(2, 4, 16, 16), (3, 1, 200, 320), (2, 1, 7, 11)]
    keys = jax.random.split(key, len(shapes))

    ok = True
    for shp, k in zip(shapes, keys):
        o, t, p = make_inputs(k, shp)
        for ftype in ('demographic_parity', 'equalized_odds'):
            got = improved_fairness_bce_loss(
                o, t, p, fairness_type=ftype, lambda_fair=0.5)
            got = jax.block_until_ready(got)
            ref = _reference(o, t, p, ftype, 0.5)
            if not jnp.allclose(got, ref, rtol=1e-4, atol=1e-5):
                ok = False
                print(f"MISMATCH shape={shp} {ftype}: kernel={got} ref={ref}")

    if ok:
        print("KERNEL_OK")
</pallas_src>

<mosaic_0001>
module attributes {stable_mosaic.version = 11 : i64} {
  func.func @kernel(%arg0: i32, %arg1: i32, %arg2: memref<16x128xf32, #tpu.memory_space<vmem>>, %arg3: memref<16x128xf32, #tpu.memory_space<vmem>>, %arg4: memref<16x128xf32, #tpu.memory_space<vmem>>, %arg5: memref<1x8x8x128xf32, #tpu.memory_space<vmem>>) attributes {dimension_semantics = [#tpu.dimension_semantics<arbitrary>, #tpu.dimension_semantics<arbitrary>], iteration_bounds = array<i64: 1, 1>, scalar_prefetch = 0 : i64, scratch_operands = 0 : i64, tpu.core_type = #tpu.core_type<tc>, window_params = [{transform_indices = @transform_0, window_bounds = array<i64: 16, 128>}, {transform_indices = @transform_1, window_bounds = array<i64: 16, 128>}, {transform_indices = @transform_2, window_bounds = array<i64: 16, 128>}, {transform_indices = @transform_3, window_bounds = array<i64: 1, 8, 8, 128>}]} {
    %c0_i32 = arith.constant 0 : i32
    %0 = arith.cmpi eq, %arg1, %c0_i32 : i32
    %1 = arith.extui %0 : i1 to i32
    %c0_i32_0 = arith.constant 0 : i32
    %2 = arith.cmpi ne, %1, %c0_i32_0 : i32
    scf.if %2 {
      %cst = arith.constant 0.000000e+00 : f32
      %13 = vector.broadcast %cst : f32 to vector<8x8x128xf32>
      %c0 = arith.constant 0 : index
      %c0_5 = arith.constant 0 : index
      %c0_6 = arith.constant 0 : index
      %c0_7 = arith.constant 0 : index
      %14 = vector.load %arg5[%c0, %c0_5, %c0_6, %c0_7] : memref<1x8x8x128xf32, #tpu.memory_space<vmem>>, vector<1x8x8x128xf32>
      %15 = vector.shape_cast %14 : vector<1x8x8x128xf32> to vector<8x8x128xf32>
      %16 = vector.shape_cast %13 : vector<8x8x128xf32> to vector<1x8x8x128xf32>
      tpu.vector_store %arg5[%c0, %c0_5, %c0_6, %c0_7], %16 {strides = array<i32>} : memref<1x8x8x128xf32, #tpu.memory_space<vmem>>, vector<1x8x8x128xf32>,
    } else {
    }
    %c1_i32 = arith.constant 1 : i32
    %3 = arith.muli %arg0, %c1_i32 : i32
    %4 = arith.addi %3, %arg1 : i32
    %c16_i32 = arith.constant 16 : i32
    %5 = arith.muli %4, %c16_i32 : i32
    %c16_i32_1 = arith.constant 16 : i32
    %6 = arith.addi %5, %c16_i32_1 : i32
    %c16_i32_2 = arith.constant 16 : i32
    %7 = arith.cmpi sle, %6, %c16_i32_2 : i32
    %8 = arith.extui %7 : i1 to i32
    %c0_i32_3 = arith.constant 0 : i32
    %9 = arith.cmpi ne, %8, %c0_i32_3 : i32
    scf.if %9 {
      %cst = arith.constant 0.000000e+00 : f32
      %13 = vector.broadcast %cst : f32 to vector<8x128xf32>
      %c0_i32_5 = arith.constant 0 : i32
      %c8_i32 = arith.constant 8 : i32
      %14 = arith.muli %c0_i32_5, %c8_i32 : i32
      %15 = tpu.assume_multiple %14, 8 : i32
      %16 = arith.index_cast %15 : i32 to index
      %c0 = arith.constant 0 : index
      %17 = vector.load %arg2[%16, %c0] : memref<16x128xf32, #tpu.memory_space<vmem>>, vector<8x128xf32>
      %18 = arith.index_cast %15 : i32 to index
      %c0_6 = arith.constant 0 : index
      %19 = vector.load %arg3[%18, %c0_6] : memref<16x128xf32, #tpu.memory_space<vmem>>, vector<8x128xf32>
      %20 = arith.index_cast %15 : i32 to index
      %c0_7 = arith.constant 0 : index
      %21 = vector.load %arg4[%20, %c0_7] : memref<16x128xf32, #tpu.memory_space<vmem>>, vector<8x128xf32>
      %22 = math.log %17 : vector<8x128xf32>
      %cst_8 = arith.constant -1.000000e+02 : f32
      %23 = vector.broadcast %cst_8 : f32 to vector<8x128xf32>
      %24 = arith.maximumf %22, %23 : vector<8x128xf32>
      %cst_9 = arith.constant 1.000000e+00 : f32
      %25 = vector.broadcast %cst_9 : f32 to vector<8x128xf32>
      %26 = arith.subf %25, %17 : vector<8x128xf32>
      %27 = math.log %26 : vector<8x128xf32>
      %cst_10 = arith.constant -1.000000e+02 : f32
      %28 = vector.broadcast %cst_10 : f32 to vector<8x128xf32>
      %29 = arith.maximumf %27, %28 : vector<8x128xf32>
      %30 = arith.mulf %19, %24 : vector<8x128xf32>
      %cst_11 = arith.constant 1.000000e+00 : f32
      %31 = vector.broadcast %cst_11 : f32 to vector<8x128xf32>
      %32 = arith.subf %31, %19 : vector<8x128xf32>
      %33 = arith.mulf %32, %29 : vector<8x128xf32>
      %34 = arith.addf %30, %33 : vector<8x128xf32>
      %cst_12 = arith.constant 0.000000e+00 : f32
      %35 = vector.broadcast %cst_12 : f32 to vector<8x128xf32>
      %36 = arith.subf %35, %34 : vector<8x128xf32>
      %cst_13 = arith.constant 5.000000e-01 : f32
      %37 = vector.broadcast %cst_13 : f32 to vector<8x128xf32>
      %38 = arith.cmpf ogt, %21, %37 : vector<8x128xf32>
      %cst_14 = arith.constant 1.000000e+00 : f32
      %cst_15 = arith.constant 0.000000e+00 : f32
      %39 = vector.broadcast %cst_14 : f32 to vector<8x128xf32>
      %40 = vector.broadcast %cst_15 : f32 to vector<8x128xf32>
      %41 = arith.select %38, %39, %40 : vector<8x128xi1>, vector<8x128xf32>
      %cst_16 = arith.constant 5.000000e-01 : f32
      %42 = vector.broadcast %cst_16 : f32 to vector<8x128xf32>
      %43 = arith.cmpf ogt, %19, %42 : vector<8x128xf32>
      %cst_17 = arith.constant 1.000000e+00 : f32
      %cst_18 = arith.constant 0.000000e+00 : f32
      %44 = vector.broadcast %cst_17 : f32 to vector<8x128xf32>
      %45 = vector.broadcast %cst_18 : f32 to vector<8x128xf32>
      %46 = arith.select %43, %44, %45 : vector<8x128xi1>, vector<8x128xf32>
      %47 = arith.mulf %41, %46 : vector<8x128xf32>
      %48 = arith.mulf %17, %47 : vector<8x128xf32>
      %49 = arith.mulf %17, %41 : vector<8x128xf32>
      %50 = arith.mulf %17, %46 : vector<8x128xf32>
      %51 = arith.addf %13, %36 : vector<8x128xf32>
      %52 = arith.addf %13, %47 : vector<8x128xf32>
      %53 = arith.addf %13, %48 : vector<8x128xf32>
      %54 = arith.addf %13, %41 : vector<8x128xf32>
      %55 = arith.addf %13, %49 : vector<8x128xf32>
      %56 = arith.addf %13, %46 : vector<8x128xf32>
      %57 = arith.addf %13, %17 : vector<8x128xf32>
      %58 = arith.addf %13, %50 : vector<8x128xf32>
      %c1_i32_19 = arith.constant 1 : i32
      %c8_i32_20 = arith.constant 8 : i32
      %59 = arith.muli %c1_i32_19, %c8_i32_20 : i32
      %60 = tpu.assume_multiple %59, 8 : i32
      %61 = arith.index_cast %60 : i32 to index
      %c0_21 = arith.constant 0 : index
      %62 = vector.load %arg2[%61, %c0_21] : memref<16x128xf32, #tpu.memory_space<vmem>>, vector<8x128xf32>
      %63 = arith.index_cast %60 : i32 to index
      %c0_22 = arith.constant 0 : index
      %64 = vector.load %arg3[%63, %c0_22] : memref<16x128xf32, #tpu.memory_space<vmem>>, vector<8x128xf32>
      %65 = arith.index_cast %60 : i32 to index
      %c0_23 = arith.constant 0 : index
      %66 = vector.load %arg4[%65, %c0_23] : memref<16x128xf32, #tpu.memory_space<vmem>>, vector<8x128xf32>
      %67 = math.log %62 : vector<8x128xf32>
      %cst_24 = arith.constant -1.000000e+02 : f32
      %68 = vector.broadcast %cst_24 : f32 to vector<8x128xf32>
      %69 = arith.maximumf %67, %68 : vector<8x128xf32>
      %cst_25 = arith.constant 1.000000e+00 : f32
      %70 = vector.broadcast %cst_25 : f32 to vector<8x128xf32>
      %71 = arith.subf %70, %62 : vector<8x128xf32>
      %72 = math.log %71 : vector<8x128xf32>
      %cst_26 = arith.constant -1.000000e+02 : f32
      %73 = vector.broadcast %cst_26 : f32 to vector<8x128xf32>
      %74 = arith.maximumf %72, %73 : vector<8x128xf32>
      %75 = arith.mulf %64, %69 : vector<8x128xf32>
      %cst_27 = arith.constant 1.000000e+00 : f32
      %76 = vector.broadcast %cst_27 : f32 to vector<8x128xf32>
      %77 = arith.subf %76, %64 : vector<8x128xf32>
      %78 = arith.mulf %77, %74 : vector<8x128xf32>
      %79 = arith.addf %75, %78 : vector<8x128xf32>
      %cst_28 = arith.constant 0.000000e+00 : f32
      %80 = vector.broadcast %cst_28 : f32 to vector<8x128xf32>
      %81 = arith.subf %80, %79 : vector<8x128xf32>
      %cst_29 = arith.constant 5.000000e-01 : f32
      %82 = vector.broadcast %cst_29 : f32 to vector<8x128xf32>
      %83 = arith.cmpf ogt, %66, %82 : vector<8x128xf32>
      %cst_30 = arith.constant 1.000000e+00 : f32
      %cst_31 = arith.constant 0.000000e+00 : f32
      %84 = vector.broadcast %cst_30 : f32 to vector<8x128xf32>
      %85 = vector.broadcast %cst_31 : f32 to vector<8x128xf32>
      %86 = arith.select %83, %84, %85 : vector<8x128xi1>, vector<8x128xf32>
      %cst_32 = arith.constant 5.000000e-01 : f32
      %87 = vector.broadcast %cst_32 : f32 to vector<8x128xf32>
      %88 = arith.cmpf ogt, %64, %87 : vector<8x128xf32>
      %cst_33 = arith.constant 1.000000e+00 : f32
      %cst_34 = arith.constant 0.000000e+00 : f32
      %89 = vector.broadcast %cst_33 : f32 to vector<8x128xf32>
      %90 = vector.broadcast %cst_34 : f32 to vector<8x128xf32>
      %91 = arith.select %88, %89, %90 : vector<8x128xi1>, vector<8x128xf32>
      %92 = arith.mulf %86, %91 : vector<8x128xf32>
      %93 = arith.mulf %62, %92 : vector<8x128xf32>
      %94 = arith.mulf %62, %86 : vector<8x128xf32>
      %95 = arith.mulf %62, %91 : vector<8x128xf32>
      %96 = arith.addf %51, %81 : vector<8x128xf32>
      %97 = arith.addf %52, %92 : vector<8x128xf32>
      %98 = arith.addf %53, %93 : vector<8x128xf32>
      %99 = arith.addf %54, %86 : vector<8x128xf32>
      %100 = arith.addf %55, %94 : vector<8x128xf32>
      %101 = arith.addf %56, %91 : vector<8x128xf32>
      %102 = arith.addf %57, %62 : vector<8x128xf32>
      %103 = arith.addf %58, %95 : vector<8x128xf32>
      %c2_i32 = arith.constant 2 : i32
      %c0_35 = arith.constant 0 : index
      %c0_36 = arith.constant 0 : index
      %c0_37 = arith.constant 0 : index
      %c0_38 = arith.constant 0 : index
      %104 = vector.load %arg5[%c0_35, %c0_36, %c0_37, %c0_38] : memref<1x8x8x128xf32, #tpu.memory_space<vmem>>, vector<1x1x8x128xf32>
      %105 = vector.shape_cast %104 : vector<1x1x8x128xf32> to vector<8x128xf32>
      %106 = arith.addf %105, %96 : vector<8x128xf32>
      %c0_39 = arith.constant 0 : index
      %c0_40 = arith.constant 0 : index
      %c0_41 = arith.constant 0 : index
      %c0_42 = arith.constant 0 : index
      %107 = vector.load %arg5[%c0_39, %c0_40, %c0_41, %c0_42] : memref<1x8x8x128xf32, #tpu.memory_space<vmem>>, vector<1x1x8x128xf32>
      %108 = vector.shape_cast %107 : vector<1x1x8x128xf32> to vector<8x128xf32>
      %109 = vector.shape_cast %106 : vector<8x128xf32> to vector<1x1x8x128xf32>
      tpu.vector_store %arg5[%c0_39, %c0_40, %c0_41, %c0_42], %109 {strides = array<i32>} : memref<1x8x8x128xf32, #tpu.memory_space<vmem>>, vector<1x1x8x128xf32>,
      %c0_43 = arith.constant 0 : index
      %c1 = arith.constant 1 : index
      %c0_44 = arith.constant 0 : index
      %c0_45 = arith.constant 0 : index
      %110 = vector.load %arg5[%c0_43, %c1, %c0_44, %c0_45] : memref<1x8x8x128xf32, #tpu.memory_space<vmem>>, vector<1x1x8x128xf32>
      %111 = vector.shape_cast %110 : vector<1x1x8x128xf32> to vector<8x128xf32>
      %112 = arith.addf %111, %97 : vector<8x128xf32>
      %c0_46 = arith.constant 0 : index
      %c1_47 = arith.constant 1 : index
      %c0_48 = arith.constant 0 : index
      %c0_49 = arith.constant 0 : index
      %113 = vector.load %arg5[%c0_46, %c1_47, %c0_48, %c0_49] : memref<1x8x8x128xf32, #tpu.memory_space<vmem>>, vector<1x1x8x128xf32>
      %114 = vector.shape_cast %113 : vector<1x1x8x128xf32> to vector<8x128xf32>
      %115 = vector.shape_cast %112 : vector<8x128xf32> to vector<1x1x8x128xf32>
      tpu.vector_store %arg5[%c0_46, %c1_47, %c0_48, %c0_49], %115 {strides = array<i32>} : memref<1x8x8x128xf32, #tpu.memory_space<vmem>>, vector<1x1x8x128xf32>,
      %c0_50 = arith.constant 0 : index
      %c2 = arith.constant 2 : index
      %c0_51 = arith.constant 0 : index
      %c0_52 = arith.constant 0 : index
      %116 = vector.load %arg5[%c0_50, %c2, %c0_51, %c0_52] : memref<1x8x8x128xf32, #tpu.memory_space<vmem>>, vector<1x1x8x128xf32>
      %117 = vector.shape_cast %116 : vector<1x1x8x128xf32> to vector<8x128xf32>
      %118 = arith.addf %117, %98 : vector<8x128xf32>
      %c0_53 = arith.constant 0 : index
      %c2_54 = arith.constant 2 : index
      %c0_55 = arith.constant 0 : index
      %c0_56 = arith.constant 0 : index
      %119 = vector.load %arg5[%c0_53, %c2_54, %c0_55, %c0_56] : memref<1x8x8x128xf32, #tpu.memory_space<vmem>>, vector<1x1x8x128xf32>
      %120 = vector.shape_cast %119 : vector<1x1x8x128xf32> to vector<8x128xf32>
      %121 = vector.shape_cast %118 : vector<8x128xf32> to vector<1x1x8x128xf32>
      tpu.vector_store %arg5[%c0_53, %c2_54, %c0_55, %c0_56], %121 {strides = array<i32>} : memref<1x8x8x128xf32, #tpu.memory_space<vmem>>, vector<1x1x8x128xf32>,
      %c0_57 = arith.constant 0 : index
      %c3 = arith.constant 3 : index
      %c0_58 = arith.constant 0 : index
      %c0_59 = arith.constant 0 : index
      %122 = vector.load %arg5[%c0_57, %c3, %c0_58, %c0_59] : memref<1x8x8x128xf32, #tpu.memory_space<vmem>>, vector<1x1x8x128xf32>
      %123 = vector.shape_cast %122 : vector<1x1x8x128xf32> to vector<8x128xf32>
      %124 = arith.addf %123, %99 : vector<8x128xf32>
      %c0_60 = arith.constant 0 : index
      %c3_61 = arith.constant 3 : index
      %c0_62 = arith.constant 0 : index
      %c0_63 = arith.constant 0 : index
      %125 = vector.load %arg5[%c0_60, %c3_61, %c0_62, %c0_63] : memref<1x8x8x128xf32, #tpu.memory_space<vmem>>, vector<1x1x8x128xf32>
      %126 = vector.shape_cast %125 : vector<1x1x8x128xf32> to vector<8x128xf32>
      %127 = vector.shape_cast %124 : vector<8x128xf32> to vector<1x1x8x128xf32>
      tpu.vector_store %arg5[%c0_60, %c3_61, %c0_62, %c0_63], %127 {strides = array<i32>} : memref<1x8x8x128xf32, #tpu.memory_space<vmem>>, vector<1x1x8x128xf32>,
      %c0_64 = arith.constant 0 : index
      %c4 = arith.constant 4 : index
      %c0_65 = arith.constant 0 : index
      %c0_66 = arith.constant 0 : index
      %128 = vector.load %arg5[%c0_64, %c4, %c0_65, %c0_66] : memref<1x8x8x128xf32, #tpu.memory_space<vmem>>, vector<1x1x8x128xf32>
      %129 = vector.shape_cast %128 : vector<1x1x8x128xf32> to vector<8x128xf32>
      %130 = arith.addf %129, %100 : vector<8x128xf32>
      %c0_67 = arith.constant 0 : index
      %c4_68 = arith.constant 4 : index
      %c0_69 = arith.constant 0 : index
      %c0_70 = arith.constant 0 : index
      %131 = vector.load %arg5[%c0_67, %c4_68, %c0_69, %c0_70] : memref<1x8x8x128xf32, #tpu.memory_space<vmem>>, vector<1x1x8x128xf32>
      %132 = vector.shape_cast %131 : vector<1x1x8x128xf32> to vector<8x128xf32>
      %133 = vector.shape_cast %130 : vector<8x128xf32> to vector<1x1x8x128xf32>
      tpu.vector_store %arg5[%c0_67, %c4_68, %c0_69, %c0_70], %133 {strides = array<i32>} : memref<1x8x8x128xf32, #tpu.memory_space<vmem>>, vector<1x1x8x128xf32>,
      %c0_71 = arith.constant 0 : index
      %c5 = arith.constant 5 : index
      %c0_72 = arith.constant 0 : index
      %c0_73 = arith.constant 0 : index
      %134 = vector.load %arg5[%c0_71, %c5, %c0_72, %c0_73] : memref<1x8x8x128xf32, #tpu.memory_space<vmem>>, vector<1x1x8x128xf32>
      %135 = vector.shape_cast %134 : vector<1x1x8x128xf32> to vector<8x128xf32>
      %136 = arith.addf %135, %101 : vector<8x128xf32>
      %c0_74 = arith.constant 0 : index
      %c5_75 = arith.constant 5 : index
      %c0_76 = arith.constant 0 : index
      %c0_77 = arith.constant 0 : index
      %137 = vector.load %arg5[%c0_74, %c5_75, %c0_76, %c0_77] : memref<1x8x8x128xf32, #tpu.memory_space<vmem>>, vector<1x1x8x128xf32>
      %138 = vector.shape_cast %137 : vector<1x1x8x128xf32> to vector<8x128xf32>
      %139 = vector.shape_cast %136 : vector<8x128xf32> to vector<1x1x8x128xf32>
      tpu.vector_store %arg5[%c0_74, %c5_75, %c0_76, %c0_77], %139 {strides = array<i32>} : memref<1x8x8x128xf32, #tpu.memory_space<vmem>>, vector<1x1x8x128xf32>,
      %c0_78 = arith.constant 0 : index
      %c6 = arith.constant 6 : index
      %c0_79 = arith.constant 0 : index
      %c0_80 = arith.constant 0 : index
      %140 = vector.load %arg5[%c0_78, %c6, %c0_79, %c0_80] : memref<1x8x8x128xf32, #tpu.memory_space<vmem>>, vector<1x1x8x128xf32>
      %141 = vector.shape_cast %140 : vector<1x1x8x128xf32> to vector<8x128xf32>
      %142 = arith.addf %141, %102 : vector<8x128xf32>
      %c0_81 = arith.constant 0 : index
      %c6_82 = arith.constant 6 : index
      %c0_83 = arith.constant 0 : index
      %c0_84 = arith.constant 0 : index
      %143 = vector.load %arg5[%c0_81, %c6_82, %c0_83, %c0_84] : memref<1x8x8x128xf32, #tpu.memory_space<vmem>>, vector<1x1x8x128xf32>
      %144 = vector.shape_cast %143 : vector<1x1x8x128xf32> to vector<8x128xf32>
      %145 = vector.shape_cast %142 : vector<8x128xf32> to vector<1x1x8x128xf32>
      tpu.vector_store %arg5[%c0_81, %c6_82, %c0_83, %c0_84], %145 {strides = array<i32>} : memref<1x8x8x128xf32, #tpu.memory_space<vmem>>, vector<1x1x8x128xf32>,
      %c0_85 = arith.constant 0 : index
      %c7 = arith.constant 7 : index
      %c0_86 = arith.constant 0 : index
      %c0_87 = arith.constant 0 : index
      %146 = vector.load %arg5[%c0_85, %c7, %c0_86, %c0_87] : memref<1x8x8x128xf32, #tpu.memory_space<vmem>>, vector<1x1x8x128xf32>
      %147 = vector.shape_cast %146 : vector<1x1x8x128xf32> to vector<8x128xf32>
      %148 = arith.addf %147, %103 : vector<8x128xf32>
      %c0_88 = arith.constant 0 : index
      %c7_89 = arith.constant 7 : index
      %c0_90 = arith.constant 0 : index
      %c0_91 = arith.constant 0 : index
      %149 = vector.load %arg5[%c0_88, %c7_89, %c0_90, %c0_91] : memref<1x8x8x128xf32, #tpu.memory_space<vmem>>, vector<1x1x8x128xf32>
      %150 = vector.shape_cast %149 : vector<1x1x8x128xf32> to vector<8x128xf32>
      %151 = vector.shape_cast %148 : vector<8x128xf32> to vector<1x1x8x128xf32>
      tpu.vector_store %arg5[%c0_88, %c7_89, %c0_90, %c0_91], %151 {strides = array<i32>} : memref<1x8x8x128xf32, #tpu.memory_space<vmem>>, vector<1x1x8x128xf32>,
    } else {
    }
    %true = arith.constant true
    %10 = arith.xori %7, %true : i1
    %11 = arith.extui %10 : i1 to i32
    %c0_i32_4 = arith.constant 0 : i32
    %12 = arith.cmpi ne, %11, %c0_i32_4 : i32
    scf.if %12 {
      %cst = arith.constant 0.000000e+00 : f32
      %13 = vector.broadcast %cst : f32 to vector<8x128xf32>
      %c0_i32_5 = arith.constant 0 : i32
      %c8_i32 = arith.constant 8 : i32
      %14 = arith.muli %c0_i32_5, %c8_i32 : i32
      %15 = tpu.assume_multiple %14, 8 : i32
      %16 = arith.index_cast %15 : i32 to index
      %c0 = arith.constant 0 : index
      %17 = vector.load %arg2[%16, %c0] : memref<16x128xf32, #tpu.memory_space<vmem>>, vector<8x128xf32>
      %18 = arith.index_cast %15 : i32 to index
      %c0_6 = arith.constant 0 : index
      %19 = vector.load %arg3[%18, %c0_6] : memref<16x128xf32, #tpu.memory_space<vmem>>, vector<8x128xf32>
      %20 = arith.index_cast %15 : i32 to index
      %c0_7 = arith.constant 0 : index
      %21 = vector.load %arg4[%20, %c0_7] : memref<16x128xf32, #tpu.memory_space<vmem>>, vector<8x128xf32>
      %c8_i32_8 = arith.constant 8 : i32
      %22 = arith.muli %c0_i32_5, %c8_i32_8 : i32
      %23 = arith.addi %5, %22 : i32
      %24 = tpu.iota {dimensions = array<i32: 0>} : vector<8x128xi32>
      %25 = vector.broadcast %23 : i32 to vector<8x128xi32>
      %26 = arith.addi %25, %24 : vector<8x128xi32>
      %c16_i32_9 = arith.constant 16 : i32
      %27 = vector.broadcast %c16_i32_9 : i32 to vector<8x128xi32>
      %28 = arith.cmpi slt, %26, %27 : vector<8x128xi32>
      %cst_10 = arith.constant 0.000000e+00 : f32
      %29 = vector.broadcast %cst_10 : f32 to vector<8x128xf32>
      %30 = arith.select %28, %17, %29 : vector<8x128xi1>, vector<8x128xf32>
      %cst_11 = arith.constant 0.000000e+00 : f32
      %31 = vector.broadcast %cst_11 : f32 to vector<8x128xf32>
      %32 = arith.select %28, %19, %31 : vector<8x128xi1>, vector<8x128xf32>
      %cst_12 = arith.constant 0.000000e+00 : f32
      %33 = vector.broadcast %cst_12 : f32 to vector<8x128xf32>
      %34 = arith.select %28, %21, %33 : vector<8x128xi1>, vector<8x128xf32>
      %35 = math.log %30 : vector<8x128xf32>
      %cst_13 = arith.constant -1.000000e+02 : f32
      %36 = vector.broadcast %cst_13 : f32 to vector<8x128xf32>
      %37 = arith.maximumf %35, %36 : vector<8x128xf32>
      %cst_14 = arith.constant 1.000000e+00 : f32
      %38 = vector.broadcast %cst_14 : f32 to vector<8x128xf32>
      %39 = arith.subf %38, %30 : vector<8x128xf32>
      %40 = math.log %39 : vector<8x128xf32>
      %cst_15 = arith.constant -1.000000e+02 : f32
      %41 = vector.broadcast %cst_15 : f32 to vector<8x128xf32>
      %42 = arith.maximumf %40, %41 : vector<8x128xf32>
      %43 = arith.mulf %32, %37 : vector<8x128xf32>
      %cst_16 = arith.constant 1.000000e+00 : f32
      %44 = vector.broadcast %cst_16 : f32 to vector<8x128xf32>
      %45 = arith.subf %44, %32 : vector<8x128xf32>
      %46 = arith.mulf %45, %42 : vector<8x128xf32>
      %47 = arith.addf %43, %46 : vector<8x128xf32>
      %cst_17 = arith.constant 0.000000e+00 : f32
      %48 = vector.broadcast %cst_17 : f32 to vector<8x128xf32>
      %49 = arith.subf %48, %47 : vector<8x128xf32>
      %cst_18 = arith.constant 5.000000e-01 : f32
      %50 = vector.broadcast %cst_18 : f32 to vector<8x128xf32>
      %51 = arith.cmpf ogt, %34, %50 : vector<8x128xf32>
      %cst_19 = arith.constant 1.000000e+00 : f32
      %cst_20 = arith.constant 0.000000e+00 : f32
      %52 = vector.broadcast %cst_19 : f32 to vector<8x128xf32>
      %53 = vector.broadcast %cst_20 : f32 to vector<8x128xf32>
      %54 = arith.select %51, %52, %53 : vector<8x128xi1>, vector<8x128xf32>
      %cst_21 = arith.constant 5.000000e-01 : f32
      %55 = vector.broadcast %cst_21 : f32 to vector<8x128xf32>
      %56 = arith.cmpf ogt, %32, %55 : vector<8x128xf32>
      %cst_22 = arith.constant 1.000000e+00 : f32
      %cst_23 = arith.constant 0.000000e+00 : f32
      %57 = vector.broadcast %cst_22 : f32 to vector<8x128xf32>
      %58 = vector.broadcast %cst_23 : f32 to vector<8x128xf32>
      %59 = arith.select %56, %57, %58 : vector<8x128xi1>, vector<8x128xf32>
      %60 = arith.mulf %54, %59 : vector<8x128xf32>
      %61 = arith.mulf %30, %60 : vector<8x128xf32>
      %62 = arith.mulf %30, %54 : vector<8x128xf32>
      %63 = arith.mulf %30, %59 : vector<8x128xf32>
      %64 = arith.addf %13, %49 : vector<8x128xf32>
      %65 = arith.addf %13, %60 : vector<8x128xf32>
      %66 = arith.addf %13, %61 : vector<8x128xf32>
      %67 = arith.addf %13, %54 : vector<8x128xf32>
      %68 = arith.addf %13, %62 : vector<8x128xf32>
      %69 = arith.addf %13, %59 : vector<8x128xf32>
      %70 = arith.addf %13, %30 : vector<8x128xf32>
      %71 = arith.addf %13, %63 : vector<8x128xf32>
      %c1_i32_24 = arith.constant 1 : i32
      %c8_i32_25 = arith.constant 8 : i32
      %72 = arith.muli %c1_i32_24, %c8_i32_25 : i32
      %73 = tpu.assume_multiple %72, 8 : i32
      %74 = arith.index_cast %73 : i32 to index
      %c0_26 = arith.constant 0 : index
      %75 = vector.load %arg2[%74, %c0_26] : memref<16x128xf32, #tpu.memory_space<vmem>>, vector<8x128xf32>
      %76 = arith.index_cast %73 : i32 to index
      %c0_27 = arith.constant 0 : index
      %77 = vector.load %arg3[%76, %c0_27] : memref<16x128xf32, #tpu.memory_space<vmem>>, vector<8x128xf32>
      %78 = arith.index_cast %73 : i32 to index
      %c0_28 = arith.constant 0 : index
      %79 = vector.load %arg4[%78, %c0_28] : memref<16x128xf32, #tpu.memory_space<vmem>>, vector<8x128xf32>
      %c8_i32_29 = arith.constant 8 : i32
      %80 = arith.muli %c1_i32_24, %c8_i32_29 : i32
      %81 = arith.addi %5, %80 : i32
      %82 = tpu.iota {dimensions = array<i32: 0>} : vector<8x128xi32>
      %83 = vector.broadcast %81 : i32 to vector<8x128xi32>
      %84 = arith.addi %83, %82 : vector<8x128xi32>
      %c16_i32_30 = arith.constant 16 : i32
      %85 = vector.broadcast %c16_i32_30 : i32 to vector<8x128xi32>
      %86 = arith.cmpi slt, %84, %85 : vector<8x128xi32>
      %cst_31 = arith.constant 0.000000e+00 : f32
      %87 = vector.broadcast %cst_31 : f32 to vector<8x128xf32>
      %88 = arith.select %86, %75, %87 : vector<8x128xi1>, vector<8x128xf32>
      %cst_32 = arith.constant 0.000000e+00 : f32
      %89 = vector.broadcast %cst_32 : f32 to vector<8x128xf32>
      %90 = arith.select %86, %77, %89 : vector<8x128xi1>, vector<8x128xf32>
      %cst_33 = arith.constant 0.000000e+00 : f32
      %91 = vector.broadcast %cst_33 : f32 to vector<8x128xf32>
      %92 = arith.select %86, %79, %91 : vector<8x128xi1>, vector<8x128xf32>
      %93 = math.log %88 : vector<8x128xf32>
      %cst_34 = arith.constant -1.000000e+02 : f32
      %94 = vector.broadcast %cst_34 : f32 to vector<8x128xf32>
      %95 = arith.maximumf %93, %94 : vector<8x128xf32>
      %cst_35 = arith.constant 1.000000e+00 : f32
      %96 = vector.broadcast %cst_35 : f32 to vector<8x128xf32>
      %97 = arith.subf %96, %88 : vector<8x128xf32>
      %98 = math.log %97 : vector<8x128xf32>
      %cst_36 = arith.constant -1.000000e+02 : f32
      %99 = vector.broadcast %cst_36 : f32 to vector<8x128xf32>
      %100 = arith.maximumf %98, %99 : vector<8x128xf32>
      %101 = arith.mulf %90, %95 : vector<8x128xf32>
      %cst_37 = arith.constant 1.000000e+00 : f32
      %102 = vector.broadcast %cst_37 : f32 to vector<8x128xf32>
      %103 = arith.subf %102, %90 : vector<8x128xf32>
      %104 = arith.mulf %103, %100 : vector<8x128xf32>
      %105 = arith.addf %101, %104 : vector<8x128xf32>
      %cst_38 = arith.constant 0.000000e+00 : f32
      %106 = vector.broadcast %cst_38 : f32 to vector<8x128xf32>
      %107 = arith.subf %106, %105 : vector<8x128xf32>
      %cst_39 = arith.constant 5.000000e-01 : f32
      %108 = vector.broadcast %cst_39 : f32 to vector<8x128xf32>
      %109 = arith.cmpf ogt, %92, %108 : vector<8x128xf32>
      %cst_40 = arith.constant 1.000000e+00 : f32
      %cst_41 = arith.constant 0.000000e+00 : f32
      %110 = vector.broadcast %cst_40 : f32 to vector<8x128xf32>
      %111 = vector.broadcast %cst_41 : f32 to vector<8x128xf32>
      %112 = arith.select %109, %110, %111 : vector<8x128xi1>, vector<8x128xf32>
      %cst_42 = arith.constant 5.000000e-01 : f32
      %113 = vector.broadcast %cst_42 : f32 to vector<8x128xf32>
      %114 = arith.cmpf ogt, %90, %113 : vector<8x128xf32>
      %cst_43 = arith.constant 1.000000e+00 : f32
      %cst_44 = arith.constant 0.000000e+00 : f32
      %115 = vector.broadcast %cst_43 : f32 to vector<8x128xf32>
      %116 = vector.broadcast %cst_44 : f32 to vector<8x128xf32>
      %117 = arith.select %114, %115, %116 : vector<8x128xi1>, vector<8x128xf32>
      %118 = arith.mulf %112, %117 : vector<8x128xf32>
      %119 = arith.mulf %88, %118 : vector<8x128xf32>
      %120 = arith.mulf %88, %112 : vector<8x128xf32>
      %121 = arith.mulf %88, %117 : vector<8x128xf32>
      %122 = arith.addf %64, %107 : vector<8x128xf32>
      %123 = arith.addf %65, %118 : vector<8x128xf32>
      %124 = arith.addf %66, %119 : vector<8x128xf32>
      %125 = arith.addf %67, %112 : vector<8x128xf32>
      %126 = arith.addf %68, %120 : vector<8x128xf32>
      %127 = arith.addf %69, %117 : vector<8x128xf32>
      %128 = arith.addf %70, %88 : vector<8x128xf32>
      %129 = arith.addf %71, %121 : vector<8x128xf32>
      %c2_i32 = arith.constant 2 : i32
      %c0_45 = arith.constant 0 : index
      %c0_46 = arith.constant 0 : index
      %c0_47 = arith.constant 0 : index
      %c0_48 = arith.constant 0 : index
      %130 = vector.load %arg5[%c0_45, %c0_46, %c0_47, %c0_48] : memref<1x8x8x128xf32, #tpu.memory_space<vmem>>, vector<1x1x8x128xf32>
      %131 = vector.shape_cast %130 : vector<1x1x8x128xf32> to vector<8x128xf32>
      %132 = arith.addf %131, %122 : vector<8x128xf32>
      %c0_49 = arith.constant 0 : index
      %c0_50 = arith.constant 0 : index
      %c0_51 = arith.constant 0 : index
      %c0_52 = arith.constant 0 : index
      %133 = vector.load %arg5[%c0_49, %c0_50, %c0_51, %c0_52] : memref<1x8x8x128xf32, #tpu.memory_space<vmem>>, vector<1x1x8x128xf32>
      %134 = vector.shape_cast %133 : vector<1x1x8x128xf32> to vector<8x128xf32>
      %135 = vector.shape_cast %132 : vector<8x128xf32> to vector<1x1x8x128xf32>
      tpu.vector_store %arg5[%c0_49, %c0_50, %c0_51, %c0_52], %135 {strides = array<i32>} : memref<1x8x8x128xf32, #tpu.memory_space<vmem>>, vector<1x1x8x128xf32>,
      %c0_53 = arith.constant 0 : index
      %c1 = arith.constant 1 : index
      %c0_54 = arith.constant 0 : index
      %c0_55 = arith.constant 0 : index
      %136 = vector.load %arg5[%c0_53, %c1, %c0_54, %c0_55] : memref<1x8x8x128xf32, #tpu.memory_space<vmem>>, vector<1x1x8x128xf32>
      %137 = vector.shape_cast %136 : vector<1x1x8x128xf32> to vector<8x128xf32>
      %138 = arith.addf %137, %123 : vector<8x128xf32>
      %c0_56 = arith.constant 0 : index
      %c1_57 = arith.constant 1 : index
      %c0_58 = arith.constant 0 : index
      %c0_59 = arith.constant 0 : index
      %139 = vector.load %arg5[%c0_56, %c1_57, %c0_58, %c0_59] : memref<1x8x8x128xf32, #tpu.memory_space<vmem>>, vector<1x1x8x128xf32>
      %140 = vector.shape_cast %139 : vector<1x1x8x128xf32> to vector<8x128xf32>
      %141 = vector.shape_cast %138 : vector<8x128xf32> to vector<1x1x8x128xf32>
      tpu.vector_store %arg5[%c0_56, %c1_57, %c0_58, %c0_59], %141 {strides = array<i32>} : memref<1x8x8x128xf32, #tpu.memory_space<vmem>>, vector<1x1x8x128xf32>,
      %c0_60 = arith.constant 0 : index
      %c2 = arith.constant 2 : index
      %c0_61 = arith.constant 0 : index
      %c0_62 = arith.constant 0 : index
      %142 = vector.load %arg5[%c0_60, %c2, %c0_61, %c0_62] : memref<1x8x8x128xf32, #tpu.memory_space<vmem>>, vector<1x1x8x128xf32>
      %143 = vector.shape_cast %142 : vector<1x1x8x128xf32> to vector<8x128xf32>
      %144 = arith.addf %143, %124 : vector<8x128xf32>
      %c0_63 = arith.constant 0 : index
      %c2_64 = arith.constant 2 : index
      %c0_65 = arith.constant 0 : index
      %c0_66 = arith.constant 0 : index
      %145 = vector.load %arg5[%c0_63, %c2_64, %c0_65, %c0_66] : memref<1x8x8x128xf32, #tpu.memory_space<vmem>>, vector<1x1x8x128xf32>
      %146 = vector.shape_cast %145 : vector<1x1x8x128xf32> to vector<8x128xf32>
      %147 = vector.shape_cast %144 : vector<8x128xf32> to vector<1x1x8x128xf32>
      tpu.vector_store %arg5[%c0_63, %c2_64, %c0_65, %c0_66], %147 {strides = array<i32>} : memref<1x8x8x128xf32, #tpu.memory_space<vmem>>, vector<1x1x8x128xf32>,
      %c0_67 = arith.constant 0 : index
      %c3 = arith.constant 3 : index
      %c0_68 = arith.constant 0 : index
      %c0_69 = arith.constant 0 : index
      %148 = vector.load %arg5[%c0_67, %c3, %c0_68, %c0_69] : memref<1x8x8x128xf32, #tpu.memory_space<vmem>>, vector<1x1x8x128xf32>
      %149 = vector.shape_cast %148 : vector<1x1x8x128xf32> to vector<8x128xf32>
      %150 = arith.addf %149, %125 : vector<8x128xf32>
      %c0_70 = arith.constant 0 : index
      %c3_71 = arith.constant 3 : index
      %c0_72 = arith.constant 0 : index
      %c0_73 = arith.constant 0 : index
      %151 = vector.load %arg5[%c0_70, %c3_71, %c0_72, %c0_73] : memref<1x8x8x128xf32, #tpu.memory_space<vmem>>, vector<1x1x8x128xf32>
      %152 = vector.shape_cast %151 : vector<1x1x8x128xf32> to vector<8x128xf32>
      %153 = vector.shape_cast %150 : vector<8x128xf32> to vector<1x1x8x128xf32>
      tpu.vector_store %arg5[%c0_70, %c3_71, %c0_72, %c0_73], %153 {strides = array<i32>} : memref<1x8x8x128xf32, #tpu.memory_space<vmem>>, vector<1x1x8x128xf32>,
      %c0_74 = arith.constant 0 : index
      %c4 = arith.constant 4 : index
      %c0_75 = arith.constant 0 : index
      %c0_76 = arith.constant 0 : index
      %154 = vector.load %arg5[%c0_74, %c4, %c0_75, %c0_76] : memref<1x8x8x128xf32, #tpu.memory_space<vmem>>, vector<1x1x8x128xf32>
      %155 = vector.shape_cast %154 : vector<1x1x8x128xf32> to vector<8x128xf32>
      %156 = arith.addf %155, %126 : vector<8x128xf32>
      %c0_77 = arith.constant 0 : index
      %c4_78 = arith.constant 4 : index
      %c0_79 = arith.constant 0 : index
      %c0_80 = arith.constant 0 : index
      %157 = vector.load %arg5[%c0_77, %c4_78, %c0_79, %c0_80] : memref<1x8x8x128xf32, #tpu.memory_space<vmem>>, vector<1x1x8x128xf32>
      %158 = vector.shape_cast %157 : vector<1x1x8x128xf32> to vector<8x128xf32>
      %159 = vector.shape_cast %156 : vector<8x128xf32> to vector<1x1x8x128xf32>
      tpu.vector_store %arg5[%c0_77, %c4_78, %c0_79, %c0_80], %159 {strides = array<i32>} : memref<1x8x8x128xf32, #tpu.memory_space<vmem>>, vector<1x1x8x128xf32>,
      %c0_81 = arith.constant 0 : index
      %c5 = arith.constant 5 : index
      %c0_82 = arith.constant 0 : index
      %c0_83 = arith.constant 0 : index
      %160 = vector.load %arg5[%c0_81, %c5, %c0_82, %c0_83] : memref<1x8x8x128xf32, #tpu.memory_space<vmem>>, vector<1x1x8x128xf32>
      %161 = vector.shape_cast %160 : vector<1x1x8x128xf32> to vector<8x128xf32>
      %162 = arith.addf %161, %127 : vector<8x128xf32>
      %c0_84 = arith.constant 0 : index
      %c5_85 = arith.constant 5 : index
      %c0_86 = arith.constant 0 : index
      %c0_87 = arith.constant 0 : index
      %163 = vector.load %arg5[%c0_84, %c5_85, %c0_86, %c0_87] : memref<1x8x8x128xf32, #tpu.memory_space<vmem>>, vector<1x1x8x128xf32>
      %164 = vector.shape_cast %163 : vector<1x1x8x128xf32> to vector<8x128xf32>
      %165 = vector.shape_cast %162 : vector<8x128xf32> to vector<1x1x8x128xf32>
      tpu.vector_store %arg5[%c0_84, %c5_85, %c0_86, %c0_87], %165 {strides = array<i32>} : memref<1x8x8x128xf32, #tpu.memory_space<vmem>>, vector<1x1x8x128xf32>,
      %c0_88 = arith.constant 0 : index
      %c6 = arith.constant 6 : index
      %c0_89 = arith.constant 0 : index
      %c0_90 = arith.constant 0 : index
      %166 = vector.load %arg5[%c0_88, %c6, %c0_89, %c0_90] : memref<1x8x8x128xf32, #tpu.memory_space<vmem>>, vector<1x1x8x128xf32>
      %167 = vector.shape_cast %166 : vector<1x1x8x128xf32> to vector<8x128xf32>
      %168 = arith.addf %167, %128 : vector<8x128xf32>
      %c0_91 = arith.constant 0 : index
      %c6_92 = arith.constant 6 : index
      %c0_93 = arith.constant 0 : index
      %c0_94 = arith.constant 0 : index
      %169 = vector.load %arg5[%c0_91, %c6_92, %c0_93, %c0_94] : memref<1x8x8x128xf32, #tpu.memory_space<vmem>>, vector<1x1x8x128xf32>
      %170 = vector.shape_cast %169 : vector<1x1x8x128xf32> to vector<8x128xf32>
      %171 = vector.shape_cast %168 : vector<8x128xf32> to vector<1x1x8x128xf32>
      tpu.vector_store %arg5[%c0_91, %c6_92, %c0_93, %c0_94], %171 {strides = array<i32>} : memref<1x8x8x128xf32, #tpu.memory_space<vmem>>, vector<1x1x8x128xf32>,
      %c0_95 = arith.constant 0 : index
      %c7 = arith.constant 7 : index
      %c0_96 = arith.constant 0 : index
      %c0_97 = arith.constant 0 : index
      %172 = vector.load %arg5[%c0_95, %c7, %c0_96, %c0_97] : memref<1x8x8x128xf32, #tpu.memory_space<vmem>>, vector<1x1x8x128xf32>
      %173 = vector.shape_cast %172 : vector<1x1x8x128xf32> to vector<8x128xf32>
      %174 = arith.addf %173, %129 : vector<8x128xf32>
      %c0_98 = arith.constant 0 : index
      %c7_99 = arith.constant 7 : index
      %c0_100 = arith.constant 0 : index
      %c0_101 = arith.constant 0 : index
      %175 = vector.load %arg5[%c0_98, %c7_99, %c0_100, %c0_101] : memref<1x8x8x128xf32, #tpu.memory_space<vmem>>, vector<1x1x8x128xf32>
      %176 = vector.shape_cast %175 : vector<1x1x8x128xf32> to vector<8x128xf32>
      %177 = vector.shape_cast %174 : vector<8x128xf32> to vector<1x1x8x128xf32>
      tpu.vector_store %arg5[%c0_98, %c7_99, %c0_100, %c0_101], %177 {strides = array<i32>} : memref<1x8x8x128xf32, #tpu.memory_space<vmem>>, vector<1x1x8x128xf32>,
    } else {
    }
    return
  }
  func.func @transform_0(%arg0: i32, %arg1: i32) -> (i32, i32) {
    %c1_i32 = arith.constant 1 : i32
    %0 = arith.muli %arg0, %c1_i32 : i32
    %1 = arith.addi %0, %arg1 : i32
    %c0_i32 = arith.constant 0 : i32
    %2 = arith.minsi %1, %c0_i32 : i32
    %c0_i32_0 = arith.constant 0 : i32
    %c0_i32_1 = arith.constant 0 : i32
    return %2, %c0_i32_0 : i32, i32
  }
  func.func @transform_1(%arg0: i32, %arg1: i32) -> (i32, i32) {
    %c1_i32 = arith.constant 1 : i32
    %0 = arith.muli %arg0, %c1_i32 : i32
    %1 = arith.addi %0, %arg1 : i32
    %c0_i32 = arith.constant 0 : i32
    %2 = arith.minsi %1, %c0_i32 : i32
    %c0_i32_0 = arith.constant 0 : i32
    %c0_i32_1 = arith.constant 0 : i32
    return %2, %c0_i32_0 : i32, i32
  }
  func.func @transform_2(%arg0: i32, %arg1: i32) -> (i32, i32) {
    %c1_i32 = arith.constant 1 : i32
    %0 = arith.muli %arg0, %c1_i32 : i32
    %1 = arith.addi %0, %arg1 : i32
    %c0_i32 = arith.constant 0 : i32
    %2 = arith.minsi %1, %c0_i32 : i32
    %c0_i32_0 = arith.constant 0 : i32
    %c0_i32_1 = arith.constant 0 : i32
    return %2, %c0_i32_0 : i32, i32
  }
  func.func @transform_3(%arg0: i32, %arg1: i32) -> (i32, i32, i32, i32) {
    %c0_i32 = arith.constant 0 : i32
    %c0_i32_0 = arith.constant 0 : i32
    %c0_i32_1 = arith.constant 0 : i32
    %c0_i32_2 = arith.constant 0 : i32
    return %arg0, %c0_i32, %c0_i32_0, %c0_i32_1 : i32, i32, i32, i32
  }
}

</mosaic_0001>

<bundles_post_ra>
// kernel: tpu_custom_call.1
= control target key start
LH: loop header
LB: loop body
LE: loop exit
PB: predicated region body
PF: predicated region fallthrough
CT: control target
= control target key end

     0   :  { %8 = vsyncpa [#allocation3], 0  ;;  %s543_s0 = inlined_call_operand.hbm [shape: f32[16,128], index: 0, kind: input, shape index: {}]   ;;  %s544_s1 = inlined_call_operand.hbm [shape: f32[16,128], index: 1, kind: input, shape index: {}]   ;;  %s545_s2 = inlined_call_operand.hbm [shape: f32[16,128], index: 2, kind: input, shape index: {}]   ;;  %s546_s3 = inlined_call_operand.hbm [shape: f32[1,8,8,128], index: 3, kind: output, shape index: {}]  }
   0x1   :  { %9 = vsyncpa [#allocation6], 0 }
   0x2   :  { %10 = vsyncpa [#allocation4], 0  ;;  %s449_s12 = smov [#allocation5]   ;;  %s450_s14 = smov [#allocation2]  }
   0x3   :  { %s40_s13 = sshll.u32 %s449_s12, 4  ;;  %s22_s15 = sshll.u32 %s450_s14, 4  ;;  %s41_s13 = int_to_ptr.vmem [resolvable:$true] %s40_s13  ;;  %s476_s15 = int_to_ptr.vmem [resolvable:$true] %s22_s15 }
   0x4   :  { %s355_s18 = scalar_lea.hbm %s544_s1, 256 }
   0x5   :  { %p356_p0 = scmp.ne.s32.totalorder %s544_s1, %s355_s18  ;;  %p359_p1 = scmp.lt.u32.totalorder %s355_s18, %s544_s1 }
   0x7   :  { %p361_p2 = pnand %p359_p1, %p356_p0 }
   0x9   :  { %364 = shalt.err (!%p361_p2)
}
   0xa   :  { %s365_s23 = scalar_lea.vmem %s41_s13, 256  ;;  %p370_p4 = scmp.lt.s32.totalorder %s41_s13, %s41_s13 }
   0xb   :  { %p366_p3 = scmp.ne.s32.totalorder %s41_s13, %s365_s23  ;;  %p371_p5 = scmp.lt.s32.totalorder %s365_s23, %s365_s23 }
   0xd   :  { %p372_p6 = por %p371_p5, %p370_p4 }
   0xf   :  { %p373_p7 = pnand %p372_p6, %p366_p3 }
  0x11   :  { %376 = shalt.err (!%p373_p7)
}
  0x12   :  { %s451_s24 = smov 128   ;;  %s452_s25 = smov 8  }
  0x13   :  { %46 = dma.hbm_to_vmem [thread:$0]  %s544_s1, 256, %s41_s13, [#allocation6], %s451_s24, %s451_s24, %s452_s25  }
  0x14   :  { %s377_s30 = scalar_lea.hbm %s543_s0, 256 }
  0x15   :  { %p378_p8 = scmp.ne.s32.totalorder %s543_s0, %s377_s30  ;;  %p381_p9 = scmp.lt.u32.totalorder %s377_s30, %s543_s0 }
  0x17   :  { %p383_p10 = pnand %p381_p9, %p378_p8 }
  0x19   :  { %386 = shalt.err (!%p383_p10)
}
  0x1a   :  { %s387_s8 = scalar_lea.vmem %s476_s15, 256  ;;  %p392_p12 = scmp.lt.s32.totalorder %s476_s15, %s476_s15 }
  0x1b   :  { %p388_p11 = scmp.ne.s32.totalorder %s476_s15, %s387_s8  ;;  %p393_p13 = scmp.lt.s32.totalorder %s387_s8, %s387_s8 }
  0x1d   :  { %p394_p0 = por %p393_p13, %p392_p12 }
  0x1f   :  { %p395_p1 = pnand %p394_p0, %p388_p11 }
  0x21   :  { %398 = shalt.err (!%p395_p1)
}
  0x22   :  { %28 = dma.hbm_to_vmem [thread:$0]  %s543_s0, 256, %s476_s15, [#allocation3], %s451_s24, %s451_s24, %s452_s25  }
  0x23   :  { %s453_s10 = smov [#allocation7]   ;;  %s399_s14 = scalar_lea.hbm %s545_s2, 256 }
  0x24   :  { %s58_s11 = sshll.u32 %s453_s10, 4  ;;  %p400_p2 = scmp.ne.s32.totalorder %s545_s2, %s399_s14  ;;  %s59_s11 = int_to_ptr.vmem [resolvable:$true] %s58_s11 }
  0x25   :  { %p403_p3 = scmp.lt.u32.totalorder %s399_s14, %s545_s2 }
  0x27   :  { %p405_p4 = pnand %p403_p3, %p400_p2 }
  0x29   :  { %408 = shalt.err (!%p405_p4)
}
  0x2a   :  { %s409_s20 = scalar_lea.vmem %s59_s11, 256  ;;  %p414_p6 = scmp.lt.s32.totalorder %s59_s11, %s59_s11 }
  0x2b   :  { %p410_p5 = scmp.ne.s32.totalorder %s59_s11, %s409_s20  ;;  %p415_p7 = scmp.lt.s32.totalorder %s409_s20, %s409_s20 }
  0x2d   :  { %p416_p8 = por %p415_p7, %p414_p6 }
  0x2f   :  { %p417_p9 = pnand %p416_p8, %p410_p5 }
  0x31   :  { %420 = shalt.err (!%p417_p9)
}
  0x32   :  { %64 = dma.hbm_to_vmem [thread:$0]  %s545_s2, 256, %s59_s11, [#allocation6], %s451_s24, %s451_s24, %s452_s25  }
  0x33   :  { %443 = dma.done.wait [#allocation3], 256  }
  0x34   :  { %444 = vsyncadd [#allocation3], 4294967040 }
  0x35   :  { %445 = dma.done.wait [#allocation6], 512  }
  0x36   :  { %446 = vsyncadd [#allocation6], 4294966784  ;;  %v105_v0 = vld [vmem:[#allocation2] sm:$0xff]  ;;  %v137_v1 = vld [vmem:[#allocation2 + $0x8] sm:$0xff]  ;;  %v454_v8 = vmov 0.0   ;;  %s455_s2 = smov [#allocation8]  }
  0x37   :  { %v106_v2 = vld [vmem:[#allocation5] sm:$0xff]  ;;  %347 = vlog2.f32 %v105_v0  ;;  %v111_v3 = vsub.f32 1.0, %v105_v0  ;;  %v145_v4 = vsub.f32 1.0, %v137_v1  ;;  %v107_v5 = vld [vmem:[#allocation7] sm:$0xff]  ;;  %v141_v6 = vld [vmem:[#allocation7 + $0x8] sm:$0xff]  ;;  %v168_v20 = vadd.f32 %v137_v1, %v105_v0  ;;  %s321_s21 = sshll.u32 %s455_s2, 4  ;;  %s322_s21 = int_to_ptr.vmem [resolvable:$true] %s321_s21 }
  0x38   :  { %349 = vlog2.f32 %v137_v1  ;;  %vm120_vm0 = vcmp.gt.f32.partialorder %v107_v5, 0.5  ;;  %vm122_vm1 = vcmp.gt.f32.partialorder %v106_v2, 0.5  ;;  %v139_v7 = vld [vmem:[#allocation5 + $0x8] sm:$0xff]  ;;  %vm154_vm2 = vcmp.gt.f32.partialorder %v141_v6, 0.5  ;;  %s421_s22 = scalar_lea.vmem %s322_s21, 1024  ;;  %p426_p11 = scmp.lt.s32.totalorder %s322_s21, %s322_s21 }
  0x39   :  { %351 = vlog2.f32 %v111_v3  ;;  %v121_v9 = vsel %vm120_vm0, 1.0, %v454_v8  ;;  %v123_v10 = vsel %vm122_vm1, 1.0, %v454_v8  ;;  %v155_v12 = vsel %vm154_vm2, 1.0, %v454_v8  ;;  %196 = vst [vmem:[#allocation8 + $0x30] sm:$0xff] %v168_v20  ;;  %p422_p10 = scmp.ne.s32.totalorder %s322_s21, %s421_s22  ;;  %p427_p12 = scmp.lt.s32.totalorder %s421_s22, %s421_s22 }
  0x3a   :  { %353 = vlog2.f32 %v145_v4  ;;  %v124_v11 = vmul.f32 %v123_v10, %v121_v9  ;;  %vm156_vm3 = vcmp.gt.f32.partialorder %v139_v7, 0.5  ;;  %v165_v14 = vadd.f32 %v155_v12, %v121_v9 }
  0x3b   :  { %v157_v13 = vsel %vm156_vm3, 1.0, %v454_v8  ;;  %v126_v15 = vmul.f32 %v121_v9, %v105_v0  ;;  %v160_v16 = vmul.f32 %v155_v12, %v137_v1  ;;  %v127_v22 = vmul.f32 %v123_v10, %v105_v0  ;;  %p428_p13 = por %p427_p12, %p426_p11 }
  0x3c   :  { %v158_v17 = vmul.f32 %v157_v13, %v155_v12  ;;  %v125_v18 = vmul.f32 %v124_v11, %v105_v0  ;;  %v167_v19 = vadd.f32 %v157_v13, %v123_v10  ;;  %v161_v23 = vmul.f32 %v157_v13, %v137_v1  ;;  %184 = vst [vmem:[#allocation8 + $0x18] sm:$0xff] %v165_v14 }
  0x3d   :  { %v166_v21 = vadd.f32 %v160_v16, %v126_v15  ;;  %v116_v36 = vsub.f32 1.0, %v106_v2  ;;  %v150_v39 = vsub.f32 1.0, %v139_v7  ;;  %p429_p0 = pnand %p428_p13, %p422_p10 }
  0x3e   :  { %v163_v24 = vadd.f32 %v158_v17, %v124_v11  ;;  %v159_v25 = vmul.f32 %v158_v17, %v137_v1  ;;  %v169_v26 = vadd.f32 %v161_v23, %v127_v22  ;;  %192 = vst [vmem:[#allocation8 + $0x28] sm:$0xff] %v167_v19 }
  0x3f   :  { %188 = vst [vmem:[#allocation8 + $0x20] sm:$0xff] %v166_v21 }
  0x40   :  { %v164_v27 = vadd.f32 %v159_v25, %v125_v18  ;;  %176 = vst [vmem:[#allocation8 + $0x8] sm:$0xff] %v163_v24  ;;  %200 = vst [vmem:[#allocation8 + $0x38] sm:$0xff] %v169_v26 }
  0x41   :  { %v348_v28 = vpop.eup %347 }
  0x42   :  { %v350_v29 = vpop.eup %349  ;;  %v109_v30 = vmul.f32 0.6931472, %v348_v28  ;;  %180 = vst [vmem:[#allocation8 + $0x10] sm:$0xff] %v164_v27 }
  0x43   :  { %v352_v31 = vpop.eup %351  ;;  %v143_v32 = vmul.f32 0.6931472, %v350_v29 }
  0x44   :  { %v354_v33 = vpop.eup %353  ;;  %v110_v34 = vmax.f32 %v109_v30, -100.0  ;;  %v113_v35 = vmul.f32 0.6931472, %v352_v31 }
  0x45   :  { %v144_v37 = vmax.f32 %v143_v32, -100.0  ;;  %v147_v38 = vmul.f32 0.6931472, %v354_v33 }
  0x46   :  { %v114_v40 = vmax.f32 %v113_v35, -100.0  ;;  %v115_v41 = vmul.f32 %v110_v34, %v106_v2 }
  0x47   :  { %v148_v42 = vmax.f32 %v147_v38, -100.0  ;;  %v149_v43 = vmul.f32 %v144_v37, %v139_v7 }
  0x48   :  { %v117_v44 = vmul.f32 %v116_v36, %v114_v40 }
  0x49   :  { %v151_v45 = vmul.f32 %v150_v39, %v148_v42 }
  0x4a   :  { %v118_v46 = vadd.f32 %v117_v44, %v115_v41 }
  0x4b   :  { %v152_v47 = vadd.f32 %v151_v45, %v149_v43 }
  0x4c   :  { %v119_v48 = vsub.f32 0.0, %v118_v46 }
  0x4d   :  { %v153_v49 = vsub.f32 0.0, %v152_v47 }
  0x4f   :  { %v162_v50 = vadd.f32 %v153_v49, %v119_v48 }
  0x51   :  { %172 = vst [vmem:[#allocation8] sm:$0xff] %v162_v50 }
  0x52   :  { %432 = shalt.err (!%p429_p0)
}
  0x53   :  { %s433_s27 = scalar_lea.hbm %s546_s3, 1024 }
  0x54   :  { %p434_p1 = scmp.ne.s32.totalorder %s546_s3, %s433_s27  ;;  %p437_p2 = scmp.lt.u32.totalorder %s433_s27, %s546_s3 }
  0x56   :  { %p439_p3 = pnand %p437_p2, %p434_p1 }
  0x58   :  { %442 = shalt.err (!%p439_p3)
}
  0x59   :  { %327 = dma.vmem_to_hbm [thread:$0]  %s322_s21, 1024, %s546_s3, [#allocation4], %s451_s24, %s451_s24, %s452_s25  }
  0x5a   :  { %447 = dma.done.wait [#allocation4], 1024  }
  0x5b   :  { %448 = vsyncadd [#allocation4], 4294966272 }
  0x5c   :  { %331 = vsyncpa [#allocation3], 1 }
  0x5d   :  { %332 = vsyncpa [#allocation6], 1 }
  0x5e   :  { %333 = vsyncpa [#allocation4], 1 }

</bundles_post_ra>
